<compile_context>
chip_gen: v7x
topology: tpu7x:2x2x1
jax: 0.10.0
libtpu: 0.0.40
codegen_flags: <defaults>
</compile_context>

<pallas_src>
import functools

import jax
import jax.numpy as jnp
from jax.experimental import pallas as pl
from jax.experimental.pallas import tpu as pltpu


def _cdiv(a, b):
    return -(-a // b)


def _round_up(x, m):
    return ((x + m - 1) // m) * m


def _sublane(dtype):
    # rows per sublane tile for the second-to-last dim
    return {4: 8, 2: 16, 1: 32}[jnp.dtype(dtype).itemsize]


def _vmem_scratch_budget():
    """Generation-aware budget for the broadcast-ctx VMEM scratch.
    v5e/v6e (128 MiB physical VMEM) -> 24 MiB, v7x (64 MiB per TC) -> 16 MiB."""
    cap = 64 << 20
    try:
        cap = int(getattr(pltpu.get_tpu_info(), "vmem_capacity_bytes", cap))
    except Exception:
        pass
    return int(min(24 << 20, cap // 4))


def _plan(n_cls, n_ctx_pos, n_ctx_neg, d, dtype):
    """Pick classes-per-step (C_BLK), grid steps and a vmem limit."""
    itemsize = jnp.dtype(dtype).itemsize
    sub = _sublane(dtype)
    lane_d = _round_up(d, 128)
    # padded VMEM footprint of one class's broadcast ctx rows (pos + neg)
    padded_per_cls = (_round_up(n_ctx_pos, sub) + _round_up(n_ctx_neg, sub)) * lane_d * itemsize
    budget = _vmem_scratch_budget()
    c_blk = max(1, min(n_cls, budget // max(padded_per_cls, 1)))
    steps = _cdiv(n_cls, c_blk)
    if n_cls >= 2:
        # v7x: "parallel" grid axis is sharded across 2 TensorCores — keep an
        # even number (>=2) of steps so neither core idles a whole step.  On
        # single-TC chips the extra step costs ~0.35 us, which is negligible.
        steps = max(steps, 2)
        if steps % 2:
            steps += 1
        steps = min(steps, n_cls)
    c_blk = _cdiv(n_cls, steps)
    steps = _cdiv(n_cls, c_blk)
    scratch_bytes = c_blk * padded_per_cls
    ctx_bytes = 2 * padded_per_cls  # pipelined ctx input blocks
    vmem_limit = int(min(48 << 20, max(16 << 20, scratch_bytes + ctx_bytes + (4 << 20))))
    return int(c_blk), int(steps), vmem_limit


def _ctx_scatter_kernel(ctx_pos_ref, ctx_neg_ref, buf_pos_ref, buf_neg_ref,
                        out_pos_ref, out_neg_ref,
                        ctxb_pos, ctxb_neg, sems,
                        *, prefix_len, c_blk, n_cls):
    """Scatter the broadcast learnable contexts into the ctx rows of the
    aliased prompt buffers.  Prefix/suffix rows are never read or written.

    ctx_*_ref : (n_ctx, D)        shared learnable context (VMEM, fetched once)
    buf_*_ref : (n_cls, seq, D)   aliased input buffers (HBM, unused directly)
    out_*_ref : (n_cls, seq, D)   aliased output buffers (HBM, DMA destination)
    ctxb_*    : (c_blk, n_ctx, D) VMEM scratch for the broadcast ctx
    """
    del buf_pos_ref, buf_neg_ref  # aliased into out_*; written only via DMA below

    n_ctx_pos, d = ctx_pos_ref.shape
    n_ctx_neg, _ = ctx_neg_ref.shape
    i = pl.program_id(0)

    # Class offset for this step.  When n_cls % c_blk != 0 the last block is
    # clamped back into range; the overlapped classes are simply rewritten
    # with identical broadcast data, so no masking / partial DMA is needed.
    c0 = jnp.minimum(i * c_blk, n_cls - c_blk)

    # Broadcast the shared ctx into VMEM scratch.  Re-done every step (rather
    # than @pl.when(i == 0)) so the kernel stays correct when the "parallel"
    # grid axis is sharded across TensorCores (each core has private scratch).
    # VMEM store bandwidth >> HBM write bandwidth, so this is a minor cost.
    ctxb_pos[...] = jnp.broadcast_to(
        ctx_pos_ref[...][None, :, :], (c_blk, n_ctx_pos, d)).astype(ctxb_pos.dtype)
    ctxb_neg[...] = jnp.broadcast_to(
        ctx_neg_ref[...][None, :, :], (c_blk, n_ctx_neg, d)).astype(ctxb_neg.dtype)

    # Write ONLY rows [prefix_len, prefix_len + n_ctx) of each class straight
    # into the aliased HBM prompt buffers (per-class rows are contiguous, so
    # this is a plain strided DMA; no (8,128) alignment needed).
    cp_pos = pltpu.make_async_copy(
        ctxb_pos,
        out_pos_ref.at[pl.ds(c0, c_blk), pl.ds(prefix_len, n_ctx_pos), :],
        sems.at[0])
    cp_neg = pltpu.make_async_copy(
        ctxb_neg,
        out_neg_ref.at[pl.ds(c0, c_blk), pl.ds(prefix_len, n_ctx_neg), :],
        sems.at[1])
    cp_pos.start()
    cp_neg.start()
    cp_pos.wait()
    cp_neg.wait()


def make_prompt_updater(n_cls, seq, d, n_ctx_pos, n_ctx_neg, dtype, prefix_len=1):
    """Returns a jitted fn (ctx_pos, ctx_neg, prompts_pos, prompts_neg) ->
    (prompts_pos, prompts_neg) that rewrites only the ctx rows IN PLACE.
    The prompt buffers are donated; callers must thread the returned arrays
    back in for the next call."""
    c_blk, steps, vmem_limit = _plan(n_cls, n_ctx_pos, n_ctx_neg, d, dtype)
    kernel = functools.partial(_ctx_scatter_kernel, prefix_len=prefix_len,
                               c_blk=c_blk, n_cls=n_cls)

    call = pl.pallas_call(
        kernel,
        out_shape=(jax.ShapeDtypeStruct((n_cls, seq, d), dtype),
                   jax.ShapeDtypeStruct((n_cls, seq, d), dtype)),
        grid=(steps,),
        in_specs=[
            # Shared contexts: constant block index -> fetched into VMEM once
            # for the whole kernel, not re-DMA'd per grid step.
            pl.BlockSpec((n_ctx_pos, d), lambda i: (0, 0)),
            pl.BlockSpec((n_ctx_neg, d), lambda i: (0, 0)),
            # Prompt buffers stay in HBM; the kernel scatters into them by DMA.
            pl.BlockSpec(memory_space=pl.ANY),
            pl.BlockSpec(memory_space=pl.ANY),
        ],
        out_specs=(pl.BlockSpec(memory_space=pl.ANY),
                   pl.BlockSpec(memory_space=pl.ANY)),
        scratch_shapes=[
            pltpu.VMEM((c_blk, n_ctx_pos, d), dtype),
            pltpu.VMEM((c_blk, n_ctx_neg, d), dtype),
            pltpu.SemaphoreType.DMA((2,)),
        ],
        # In-place update: outputs alias the prompt buffers; untouched prefix /
        # suffix rows are preserved, only the ctx rows are rewritten.
        input_output_aliases={2: 0, 3: 1},
        compiler_params=pltpu.CompilerParams(
            dimension_semantics=("parallel",),
            vmem_limit_bytes=vmem_limit),
    )

    @functools.partial(jax.jit, donate_argnums=(2, 3))
    def update(ctx_pos, ctx_neg, prompts_pos, prompts_neg):
        return call(ctx_pos, ctx_neg, prompts_pos, prompts_neg)

    return update


class ContextOptimizationPallas:
    """Synthetic JAX/Pallas port of ContextOptimization (CLIP-style tokenizer,
    prefix_len == 1, generic (non-class-specific) contexts)."""
    # TODO(synk): class-specific contexts (COOP_CSC) would need a per-class ctx
    #   scatter (one DMA per class block with a class-indexed ctx BlockSpec);
    #   BERT-style prefix_len == 0 is supported by the kernel but not exercised.

    def __init__(self, n_cls, n_ctx_pos, n_ctx_neg, ctx_dim, seq_len, key):
        assert seq_len > 1 + max(n_ctx_pos, n_ctx_neg)
        k = jax.random.split(key, 6)
        std = 0.02
        # learnable contexts (generic context: (n_ctx, ctx_dim))
        self.ctx_pos = std * jax.random.normal(k[0], (n_ctx_pos, ctx_dim), jnp.float32)
        self.ctx_neg = std * jax.random.normal(k[1], (n_ctx_neg, ctx_dim), jnp.float32)
        # frozen token-embedding buffers (stand-ins for text_encoder.get_embedding)
        emb_pos = std * jax.random.normal(k[2], (n_cls, seq_len, ctx_dim), jnp.float32)
        emb_neg = std * jax.random.normal(k[3], (n_cls, seq_len, ctx_dim), jnp.float32)
        prefix_len = 1  # CLIP-style (token_type does not contain 'BERT')
        self.prefix_len = prefix_len
        # prefix/suffix slices kept for parity with the PyTorch registered buffers
        self.token_prefix_pos = emb_pos[:, :prefix_len, :]
        self.token_prefix_neg = emb_neg[:, :prefix_len, :]
        self.token_suffix_pos = emb_pos[:, prefix_len + n_ctx_pos:, :]
        self.token_suffix_neg = emb_neg[:, prefix_len + n_ctx_neg:, :]
        # Working prompt buffers: independent copies of the frozen embeddings.
        # Prefix + suffix rows are already correct; each forward() only rewrites
        # the ctx rows in place.  These buffers are DONATED to the jitted update
        # and the returned (aliased) arrays are threaded back for the next call,
        # so no defensive full-buffer copy is made per forward.
        self._prompts_pos = jnp.array(emb_pos)
        self._prompts_neg = jnp.array(emb_neg)
        self._update = make_prompt_updater(n_cls, seq_len, ctx_dim,
                                           n_ctx_pos, n_ctx_neg,
                                           jnp.float32, prefix_len)
        # synthetic tokenized prompts (pass-through outputs)
        self.tokenized_prompts_pos = {
            "input_ids": jax.random.randint(k[4], (n_cls, seq_len), 0, 1000, jnp.int32),
            "attention_mask": jnp.ones((n_cls, seq_len), jnp.int32),
        }
        self.tokenized_prompts_neg = {
            "input_ids": jax.random.randint(k[5], (n_cls, seq_len), 0, 1000, jnp.int32),
            "attention_mask": jnp.ones((n_cls, seq_len), jnp.int32),
        }
        self.n_cls = n_cls
        self.n_ctx_pos = n_ctx_pos
        self.n_ctx_neg = n_ctx_neg

    def forward(self):
        prompts_pos, prompts_neg = self._update(
            self.ctx_pos, self.ctx_neg, self._prompts_pos, self._prompts_neg)
        # Thread the in-place-updated buffers back (the donated inputs are now
        # invalid).  NOTE: the returned arrays are the SAME buffers and will be
        # donated again on the next forward() — consume before calling again.
        self._prompts_pos = prompts_pos
        self._prompts_neg = prompts_neg
        return (self.tokenized_prompts_pos, self.tokenized_prompts_neg,
                prompts_pos, prompts_neg, None, None)


def _reference_prompts(prefix, ctx, suffix):
    n_cls = prefix.shape[0]
    ctx_e = jnp.broadcast_to(ctx[None], (n_cls,) + ctx.shape)
    return jnp.concatenate([prefix, ctx_e, suffix], axis=1)


if __name__ == "__main__":
    key = jax.random.PRNGKey(0)
    # small shapes; n_cls=5 is deliberately NOT a multiple of the class block so
    # the remainder-clamp path of the kernel is exercised.
    n_cls, ctx_dim, seq_len = 5, 128, 16
    n_ctx_pos, n_ctx_neg = 4, 6

    module = ContextOptimizationPallas(n_cls, n_ctx_pos, n_ctx_neg,
                                       ctx_dim, seq_len, key)

    # --- forward #1 ---
    (tok_pos, tok_neg, prompts_pos, prompts_neg, _, _) = module.forward()
    jax.block_until_ready((prompts_pos, prompts_neg))

    ref_pos = _reference_prompts(module.token_prefix_pos, module.ctx_pos,
                                 module.token_suffix_pos)
    ref_neg = _reference_prompts(module.token_prefix_neg, module.ctx_neg,
                                 module.token_suffix_neg)
    assert prompts_pos.shape == (n_cls, seq_len, ctx_dim)
    assert prompts_neg.shape == (n_cls, seq_len, ctx_dim)
    assert bool(jnp.allclose(prompts_pos, ref_pos))
    assert bool(jnp.allclose(prompts_neg, ref_neg))
    assert tok_pos["input_ids"].shape == (n_cls, seq_len)

    # --- forward #2: same ctx, buffers threaded/donated again ---
    (_, _, prompts_pos2, prompts_neg2, _, _) = module.forward()
    jax.block_until_ready((prompts_pos2, prompts_neg2))
    assert bool(jnp.allclose(prompts_pos2, ref_pos))
    assert bool(jnp.allclose(prompts_neg2, ref_neg))

    # --- forward #3: updated ctx (training step) — only ctx rows change ---
    module.ctx_pos = module.ctx_pos + 0.123
    module.ctx_neg = module.ctx_neg - 0.321
    (_, _, prompts_pos3, prompts_neg3, _, _) = module.forward()
    jax.block_until_ready((prompts_pos3, prompts_neg3))
    ref_pos3 = _reference_prompts(module.token_prefix_pos, module.ctx_pos,
                                  module.token_suffix_pos)
    ref_neg3 = _reference_prompts(module.token_prefix_neg, module.ctx_neg,
                                  module.token_suffix_neg)
    assert bool(jnp.allclose(prompts_pos3, ref_pos3))
    assert bool(jnp.allclose(prompts_neg3, ref_neg3))

    print("KERNEL_OK")
</pallas_src>

<mosaic_0001>
module attributes {stable_mosaic.version = 11 : i64} {
  func.func @_ctx_scatter_kernel(%arg0: i32, %arg1: memref<4x128xf32, #tpu.memory_space<vmem>>, %arg2: memref<6x128xf32, #tpu.memory_space<vmem>>, %arg3: memref<5x16x128xf32, #tpu.memory_space<any>>, %arg4: memref<5x16x128xf32, #tpu.memory_space<any>>, %arg5: memref<5x16x128xf32, #tpu.memory_space<any>>, %arg6: memref<5x16x128xf32, #tpu.memory_space<any>>, %arg7: memref<3x4x128xf32, #tpu.memory_space<vmem>>, %arg8: memref<3x6x128xf32, #tpu.memory_space<vmem>>, %arg9: memref<2x!tpu.dma_semaphore, #tpu.memory_space<semaphore_mem>>) attributes {dimension_semantics = [#tpu.dimension_semantics<parallel>], iteration_bounds = array<i64: 2>, scalar_prefetch = 0 : i64, scratch_operands = 3 : i64, tpu.core_type = #tpu.core_type<tc>, window_params = [{pipeline_mode = #tpu.pipeline_mode<synchronous>, transform_indices = @transform_0, window_bounds = array<i64: 4, 128>}, {pipeline_mode = #tpu.pipeline_mode<synchronous>, transform_indices = @transform_1, window_bounds = array<i64: 6, 128>}, {}, {}, {}, {}]} {
    %c3_i32 = arith.constant 3 : i32
    %0 = arith.muli %arg0, %c3_i32 : i32
    %c2_i32 = arith.constant 2 : i32
    %1 = arith.minsi %0, %c2_i32 : i32
    %c0 = arith.constant 0 : index
    %c0_0 = arith.constant 0 : index
    %2 = vector.load %arg1[%c0, %c0_0] : memref<4x128xf32, #tpu.memory_space<vmem>>, vector<4x128xf32>
    %3 = vector.shape_cast %2 : vector<4x128xf32> to vector<1x4x128xf32>
    %4 = vector.shape_cast %3 : vector<1x4x128xf32> to vector<1x4x128xf32>
    %5 = vector.broadcast %4 : vector<1x4x128xf32> to vector<3x4x128xf32>
    %c0_1 = arith.constant 0 : index
    %c0_2 = arith.constant 0 : index
    %c0_3 = arith.constant 0 : index
    %6 = vector.load %arg7[%c0_1, %c0_2, %c0_3] : memref<3x4x128xf32, #tpu.memory_space<vmem>>, vector<3x4x128xf32>
    tpu.vector_store %arg7[%c0_1, %c0_2, %c0_3], %5 {strides = array<i32>} : memref<3x4x128xf32, #tpu.memory_space<vmem>>, vector<3x4x128xf32>,
    %c0_4 = arith.constant 0 : index
    %c0_5 = arith.constant 0 : index
    %7 = vector.load %arg2[%c0_4, %c0_5] : memref<6x128xf32, #tpu.memory_space<vmem>>, vector<6x128xf32>
    %8 = vector.shape_cast %7 : vector<6x128xf32> to vector<1x6x128xf32>
    %9 = vector.shape_cast %8 : vector<1x6x128xf32> to vector<1x6x128xf32>
    %10 = vector.broadcast %9 : vector<1x6x128xf32> to vector<3x6x128xf32>
    %c0_6 = arith.constant 0 : index
    %c0_7 = arith.constant 0 : index
    %c0_8 = arith.constant 0 : index
    %11 = vector.load %arg8[%c0_6, %c0_7, %c0_8] : memref<3x6x128xf32, #tpu.memory_space<vmem>>, vector<3x6x128xf32>
    tpu.vector_store %arg8[%c0_6, %c0_7, %c0_8], %10 {strides = array<i32>} : memref<3x6x128xf32, #tpu.memory_space<vmem>>, vector<3x6x128xf32>,
    %c0_i32 = arith.constant 0 : i32
    %c1_i32 = arith.constant 1 : i32
    %c0_i32_9 = arith.constant 0 : i32
    %12 = tpu.memref_slice %arg5[%1, %c1_i32, %c0_i32_9] : memref<5x16x128xf32, #tpu.memory_space<any>> -> memref<3x4x128xf32, #tpu.memory_space<any>>
    %13 = tpu.memref_slice %arg9[%c0_i32] : memref<2x!tpu.dma_semaphore, #tpu.memory_space<semaphore_mem>> -> memref<1x!tpu.dma_semaphore, #tpu.memory_space<semaphore_mem>>
    %14 = tpu.memref_squeeze %13 : memref<1x!tpu.dma_semaphore, #tpu.memory_space<semaphore_mem>> -> memref<!tpu.dma_semaphore, #tpu.memory_space<semaphore_mem>>
    tpu.enqueue_dma source(%arg7 : memref<3x4x128xf32, #tpu.memory_space<vmem>>) target(%12 : memref<3x4x128xf32, #tpu.memory_space<any>>) target_semaphore(%14 : memref<!tpu.dma_semaphore, #tpu.memory_space<semaphore_mem>>)
    %c1_i32_10 = arith.constant 1 : i32
    %c1_i32_11 = arith.constant 1 : i32
    %c0_i32_12 = arith.constant 0 : i32
    %15 = tpu.memref_slice %arg6[%1, %c1_i32_11, %c0_i32_12] : memref<5x16x128xf32, #tpu.memory_space<any>> -> memref<3x6x128xf32, #tpu.memory_space<any>>
    %16 = tpu.memref_slice %arg9[%c1_i32_10] : memref<2x!tpu.dma_semaphore, #tpu.memory_space<semaphore_mem>> -> memref<1x!tpu.dma_semaphore, #tpu.memory_space<semaphore_mem>>
    %17 = tpu.memref_squeeze %16 : memref<1x!tpu.dma_semaphore, #tpu.memory_space<semaphore_mem>> -> memref<!tpu.dma_semaphore, #tpu.memory_space<semaphore_mem>>
    tpu.enqueue_dma source(%arg8 : memref<3x6x128xf32, #tpu.memory_space<vmem>>) target(%15 : memref<3x6x128xf32, #tpu.memory_space<any>>) target_semaphore(%17 : memref<!tpu.dma_semaphore, #tpu.memory_space<semaphore_mem>>)
    %c0_i32_13 = arith.constant 0 : i32
    %c1_i32_14 = arith.constant 1 : i32
    %c0_i32_15 = arith.constant 0 : i32
    %18 = tpu.memref_slice %arg5[%1, %c1_i32_14, %c0_i32_15] : memref<5x16x128xf32, #tpu.memory_space<any>> -> memref<3x4x128xf32, #tpu.memory_space<any>>
    %19 = tpu.memref_slice %arg9[%c0_i32_13] : memref<2x!tpu.dma_semaphore, #tpu.memory_space<semaphore_mem>> -> memref<1x!tpu.dma_semaphore, #tpu.memory_space<semaphore_mem>>
    %20 = tpu.memref_squeeze %19 : memref<1x!tpu.dma_semaphore, #tpu.memory_space<semaphore_mem>> -> memref<!tpu.dma_semaphore, #tpu.memory_space<semaphore_mem>>
    tpu.wait_dma2 semaphore(%20 : memref<!tpu.dma_semaphore, #tpu.memory_space<semaphore_mem>>) src(%arg7 : memref<3x4x128xf32, #tpu.memory_space<vmem>>) dst(%18 : memref<3x4x128xf32, #tpu.memory_space<any>>)
    %c1_i32_16 = arith.constant 1 : i32
    %c1_i32_17 = arith.constant 1 : i32
    %c0_i32_18 = arith.constant 0 : i32
    %21 = tpu.memref_slice %arg6[%1, %c1_i32_17, %c0_i32_18] : memref<5x16x128xf32, #tpu.memory_space<any>> -> memref<3x6x128xf32, #tpu.memory_space<any>>
    %22 = tpu.memref_slice %arg9[%c1_i32_16] : memref<2x!tpu.dma_semaphore, #tpu.memory_space<semaphore_mem>> -> memref<1x!tpu.dma_semaphore, #tpu.memory_space<semaphore_mem>>
    %23 = tpu.memref_squeeze %22 : memref<1x!tpu.dma_semaphore, #tpu.memory_space<semaphore_mem>> -> memref<!tpu.dma_semaphore, #tpu.memory_space<semaphore_mem>>
    tpu.wait_dma2 semaphore(%23 : memref<!tpu.dma_semaphore, #tpu.memory_space<semaphore_mem>>) src(%arg8 : memref<3x6x128xf32, #tpu.memory_space<vmem>>) dst(%21 : memref<3x6x128xf32, #tpu.memory_space<any>>)
    return
  }
  func.func @transform_0(%arg0: i32) -> (i32, i32) {
    %c0_i32 = arith.constant 0 : i32
    %c0_i32_0 = arith.constant 0 : i32
    %c0_i32_1 = arith.constant 0 : i32
    return %c0_i32, %c0_i32_0 : i32, i32
  }
  func.func @transform_1(%arg0: i32) -> (i32, i32) {
    %c0_i32 = arith.constant 0 : i32
    %c0_i32_0 = arith.constant 0 : i32
    %c0_i32_1 = arith.constant 0 : i32
    return %c0_i32, %c0_i32_0 : i32, i32
  }
}

</mosaic_0001>

<bundles_post_ra>
// kernel: update.1
= control target key start
LH: loop header
LB: loop body
LE: loop exit
PB: predicated region body
PF: predicated region fallthrough
CT: control target
= control target key end

     0   :  { %11 = vsyncpa [#allocation6], 0  ;;  %s522_s0 = inlined_call_operand.hbm [shape: f32[4,128], index: 0, kind: input, shape index: {}]   ;;  %s523_s1 = inlined_call_operand.hbm [shape: f32[6,128], index: 1, kind: input, shape index: {}]   ;;  %s524_s2 = inlined_call_operand.hbm [shape: f32[5,16,128], index: 2, kind: input, shape index: {}, may-alias: {2,4}]   ;;  %s525_s3 = inlined_call_operand.hbm [shape: f32[5,16,128], index: 3, kind: input, shape index: {}, may-alias: {3,5}]   ;;  %s526_s4 = inlined_call_operand.hbm [shape: f32[5,16,128], index: 4, kind: output, shape index: {0}, may-alias: {2,4}]   ;;  %s527_s5 = inlined_call_operand.hbm [shape: f32[5,16,128], index: 5, kind: output, shape index: {1}, may-alias: {3,5}]  }
   0x1   :  { %12 = vsyncpa [#allocation8], 0  ;;  %s400_s18 = smov 0  }
   0x2 LB: > { %s361_s2 = smov [#allocation5]   ;;  %s181_s19 = sadd.s32 4294967295, %s359_s18   ;;  %s359_s18 = sphi %s400_s18, %s18_s18  }
   0x3   : > { %s61_s3 = sshll.u32 %s361_s2, 4  ;;  %p213_p1 = scmp.ge.s32.totalorder %s359_s18, 1  ;;  %s62_s3 = int_to_ptr.vmem [resolvable:$true] %s61_s3 }
   0x4   : > { %p410_p2 = scmp.eq.s32.totalorder %s181_s19, 0  ;;  %s362_s22 = smov [#allocation7]  }
   0x5   : > { %s72_s23 = sshll.u32 %s362_s22, 4  ;;  %s235_s26 = scalar_lea.hbm %s522_s0, 64  ;;  %s420_s23 = int_to_ptr.vmem [resolvable:$true] %s72_s23 }
   0x6   : > { %s530_s20 = scalar_select %p410_p2, 1, 0 }
   0x7   : > { %p416_p3 = pnand %p410_p2, %p213_p1  ;;  %p236_p4 = scmp.ne.s32.totalorder %s522_s0, %s235_s26 }
   0x8   : > { %p242_p8 = scmp.lt.u32.totalorder %s235_s26, %s522_s0 }
   0x9   : > { %p237_p5 = pneg %p416_p3 }
   0xb   : > { %p238_p6 = pnand %p237_p5, %p236_p4 }
   0xd   : > { %p239_p7 = pneg %p238_p6 }
   0xf   : > { %p244_p9 = pnand %p242_p8, %p239_p7 }
  0x11   : > { %247 = shalt.err (!%p244_p9)
}
  0x12   : > { %s248_s6 = scalar_lea.vmem %s62_s3, 64  ;;  %p256_p13 = scmp.lt.s32.totalorder %s62_s3, %s62_s3 }
  0x13   : > { %p249_p10 = scmp.ne.s32.totalorder %s62_s3, %s248_s6  ;;  %p257_p1 = scmp.lt.s32.totalorder %s248_s6, %s248_s6 }
  0x15   : > { %p251_p11 = pnand %p249_p10, %p237_p5  ;;  %p258_p0 = por %p257_p1, %p256_p13 }
  0x17   : > { %p252_p12 = pneg %p251_p11 }
  0x19   : > { %p259_p2 = pnand %p258_p0, %p252_p12 }
  0x1b   : > { %262 = shalt.err (!%p259_p2)
}
  0x1c   : > { %209 = dma.hbm_to_vmem [thread:$0]  (!%p416_p3), %s522_s0, 64, %s62_s3, [#allocation6]  }
  0x1d   : > { %s263_s11 = scalar_lea.hbm %s523_s1, 128 }
  0x1e   : > { %p264_p4 = scmp.ne.s32.totalorder %s523_s1, %s263_s11  ;;  %p270_p2 = scmp.lt.u32.totalorder %s263_s11, %s523_s1 }
  0x20   : > { %p266_p6 = pnand %p264_p4, %p237_p5 }
  0x22   : > { %p267_p0 = pneg %p266_p6 }
  0x24   : > { %p272_p7 = pnand %p270_p2, %p267_p0 }
  0x26   : > { %275 = shalt.err (!%p272_p7)
}
  0x27   : > { %s276_s16 = scalar_lea.vmem %s420_s23, 128  ;;  %p284_p11 = scmp.lt.s32.totalorder %s420_s23, %s420_s23 }
  0x28   : > { %p277_p8 = scmp.ne.s32.totalorder %s420_s23, %s276_s16  ;;  %p285_p12 = scmp.lt.s32.totalorder %s276_s16, %s276_s16 }
  0x2a   : > { %p279_p9 = pnand %p277_p8, %p237_p5  ;;  %p286_p13 = por %p285_p12, %p284_p11 }
  0x2c   : > { %p280_p10 = pneg %p279_p9 }
  0x2e   : > { %p287_p1 = pnand %p286_p13, %p280_p10 }
  0x30   : > { %290 = shalt.err (!%p287_p1)
}
  0x31   : > { %212 = dma.hbm_to_vmem [thread:$0]  (!%p416_p3), %s523_s1, 128, %s420_s23, [#allocation8]  }
  0x32   : > { %p532_p4 = scmp.lt.s32.totalorder %s359_s18, 1 }
  0x33   : > { %p533_p6 = scmp.ne.s32.totalorder (!%p532_p4), %s530_s20, 0 }
  0x34   : > { %83 = sbr.rel (%p532_p4) target bundleno = 114 (0x72), region = 28 }
  0x3b   : > { %346 = dma.done.wait (%p533_p6), [#allocation6], 64  }
  0x3c   : > { %348 = vsyncadd (%p533_p6), [#allocation6], 4294967232 }
  0x3d   : > { %350 = dma.done.wait (%p533_p6), [#allocation8], 128  }
  0x3e   : > { %352 = vsyncadd (%p533_p6), [#allocation8], 4294967168  ;;  %s97_s3 = smul.u32 3, %s181_s19  ;;  %s363_s21 = smov [#allocation2]   ;;  %v100_v0 = vld [vmem:[#allocation5] sm:$0xf] }
  0x3f   : > { %s113_s22 = sshll.u32 %s363_s21, 4  ;;  %s364_s24 = smov [#allocation3]   ;;  %v104_v1 = vld [vmem:[#allocation7] sm:$0x3f]  ;;  %101 = vst [vmem:[#allocation2] sm:$0xf] %v100_v0  ;;  %s481_s22 = int_to_ptr.vmem [resolvable:$true] %s113_s22 }
  0x40   : > { %p98_p3 = scmp.lt.s32.totalorder %s97_s3, 2  ;;  %s483_s25 = sshll.u32 %s364_s24, 4  ;;  %102 = vst [vmem:[#allocation2 + $0x4] sm:$0xf] %v100_v0  ;;  %103 = vst [vmem:[#allocation2 + $0x8] sm:$0xf] %v100_v0  ;;  %s122_s25 = int_to_ptr.vmem [resolvable:$true] %s483_s25 }
  0x41   : > { %105 = vst [vmem:[#allocation3] sm:$0x3f] %v104_v1  ;;  %106 = vst [vmem:[#allocation3 + $0x8] sm:$0x3f] %v104_v1  ;;  %s291_s7 = scalar_lea.vmem %s481_s22, 192  ;;  %p296_p0 = scmp.lt.s32.totalorder %s481_s22, %s481_s22 }
  0x42   : > { %s535_s3 = smov (!%p98_p3, %s97_s3), 2  ;;  %107 = vst [vmem:[#allocation3 + $0x10] sm:$0x3f] %v104_v1  ;;  %p292_p5 = scmp.ne.s32.totalorder %s481_s22, %s291_s7 }
  0x43   : > { %s196_s23 = sshll.u32 %s535_s3, 8  ;;  %p297_p2 = scmp.lt.s32.totalorder %s291_s7, %s291_s7 }
  0x44   : > { %s152_s27 = scalar_lea.hbm %s526_s4, %s196_s23  ;;  %s491_s29 = scalar_lea.hbm %s527_s5, %s196_s23 }
  0x45   : > { %s153_s30 = scalar_lea.hbm %s152_s27, 16  ;;  %s494_s6 = scalar_lea.hbm %s491_s29, 16 }
  0x46   : > { %p298_p7 = por %p297_p2, %p296_p0 }
  0x48   : > { %p299_p8 = pnand %p298_p7, %p292_p5 }
  0x4a   : > { %302 = shalt.err (!%p299_p8)  }
  0x4b   : > { %s315_s8 = scalar_lea.hbm %s152_s27, 208  ;;  %s305_s11 = scalar_lea.hbm %s526_s4, 1280 }
  0x4c   : > { %p304_p9 = scmp.ne.s32.totalorder %s153_s30, %s315_s8  ;;  %p306_p10 = scmp.lt.u32.totalorder %s153_s30, %s526_s4 }
  0x4d   : > { %p307_p11 = scmp.lt.u32.totalorder %s305_s11, %s315_s8  ;;  %p309_p13 = scmp.lt.u32.totalorder %s315_s8, %s153_s30 }
  0x4f   : > { %p308_p12 = por %p307_p11, %p306_p10 }
  0x51   : > { %p310_p1 = por %p309_p13, %p308_p12 }
  0x53   : > { %p311_p4 = pnand %p310_p1, %p304_p9 }
  0x55   : > { %314 = shalt.err (!%p311_p4)  }
  0x56   : > { %s365_s14 = smov 64   ;;  %s366_s15 = smov 256  }
  0x57   : > { %s367_s16 = smov 4   ;;  %s316_s17 = scalar_lea.vmem %s122_s25, 288 }
  0x58   : > { %116 = dma.vmem_to_hbm [thread:$0]  %s481_s22, 192, %s153_s30, [#allocation4], %s365_s14, %s366_s15, %s367_s16 }
  0x59   : > { %p317_p6 = scmp.ne.s32.totalorder %s122_s25, %s316_s17  ;;  %s320_s2 = scalar_lea.vmem %s122_s25, 384 }
  0x5a   : > { %p321_p3 = scmp.lt.s32.totalorder %s122_s25, %s122_s25  ;;  %p322_p5 = scmp.lt.s32.totalorder %s320_s2, %s316_s17 }
  0x5c   : > { %p323_p0 = por %p322_p5, %p321_p3 }
  0x5e   : > { %p324_p2 = pnand %p323_p0, %p317_p6 }
  0x60   : > { %327 = shalt.err (!%p324_p2)  }
  0x61   : > { %s340_s3 = scalar_lea.hbm %s491_s29, 304  ;;  %s330_s24 = scalar_lea.hbm %s527_s5, 1280 }
  0x62   : > { %p329_p7 = scmp.ne.s32.totalorder %s494_s6, %s340_s3  ;;  %p331_p8 = scmp.lt.u32.totalorder %s494_s6, %s527_s5 }
  0x63   : > { %p332_p9 = scmp.lt.u32.totalorder %s330_s24, %s340_s3  ;;  %p334_p11 = scmp.lt.u32.totalorder %s340_s3, %s494_s6 }
  0x65   : > { %p333_p10 = por %p332_p9, %p331_p8 }
  0x67   : > { %p335_p12 = por %p334_p11, %p333_p10 }
  0x69   : > { %p336_p13 = pnand %p335_p12, %p329_p7 }
  0x6b   : > { %339 = shalt.err (!%p336_p13)  }
  0x6c   : > { %s368_s26 = smov 128   ;;  %s369_s27 = smov 6  }
  0x6d   : > { %124 = dma.vmem_to_hbm [thread:$0]  %s122_s25, 288, %s494_s6, [#allocation4 + $0x1], %s368_s26, %s366_s15, %s369_s27 }
  0x6e   : > { %353 = dma.done.wait [#allocation4], 192 }
  0x6f   : > { %354 = vsyncadd [#allocation4], 4294967104 }
  0x70   : > { %355 = dma.done.wait [#allocation4 + $0x1], 288 }
  0x71   : > { %356 = vsyncadd [#allocation4 + $0x1], 4294967008 }
  0x72 PF: > { %s18_s18 = sadd.s32 1, %s359_s18  }
  0x73   : > { %p15_p1 = scmp.ge.s32.totalorder %s18_s18, 3  }
  0x75   :  { %17 = sbr.rel (!%p15_p1) target bundleno = 2 (0x2), region = 52 }
  0x7c   :  { %133 = vsyncpa [#allocation6], 1 }
  0x7d   :  { %135 = vsyncpa [#allocation6 + $0x1], 1 }
  0x7e   :  { %136 = vsyncpa [#allocation8], 1 }
  0x7f   :  { %137 = vsyncmov [#allocation4] }
  0x82   :  { %s138_s19 = vpop.sfrf %137 }
  0x83   :  { %p194_p4 = scmp.ne.s32.totalorder %s138_s19, 0 }
  0x85   :  { %142 = shalt.err (%p194_p4)  }
  0x86   :  { %144 = vsyncmov [#allocation4 + $0x1] }
  0x89   :  { %s145_s25 = vpop.sfrf %144 }
  0x8a   :  { %p195_p6 = scmp.ne.s32.totalorder %s145_s25, 0 }
  0x8c   :  { %149 = shalt.err (%p195_p6)  }

</bundles_post_ra>
